<compile_context>
chip_gen: v7x
topology: tpu7x:2x2x1
jax: 0.10.0
libtpu: 0.0.40
codegen_flags: <defaults>
</compile_context>

<pallas_src>
import jax
import jax.numpy as jnp
from jax import lax
from jax.experimental import pallas as pl
from jax.experimental.pallas import tpu as pltpu

HIDDEN = 16
G3 = 3 * HIDDEN  # 48 — packed r/z/n gate dimension


def gru_linear_kernel(x_ref, w_hh_ref, vecs_ref, y_ref):
    """GRU recurrence in column form + output Linear, latency-optimized."""
    seq = x_ref.shape[0]
    H = HIDDEN

    # --- one-time loads, hoisted out of the recurrence ---------------------
    w_hh = w_hh_ref[...]                 # (48, 16) bf16, PyTorch row order r,z,n
    w_i_col = vecs_ref[0]                # (48, 1) f32 : W_ih column
    b_gi_col = vecs_ref[1]               # (48, 1) f32 : [b_ir+b_hr ; b_iz+b_hz ; b_in]
    misc = vecs_ref[2]                   # (48, 1) f32 : [b_hn ; w_out ; b_out ; pad]
    b_hn = misc[0:H, :]                  # (16, 1)
    w_out_col = misc[H:2 * H, :]         # (16, 1)
    b_out = misc[2 * H:2 * H + 1, :]     # (1, 1)

    def step(t, h):
        # Hidden-side gates: ONE fused MXU pass (48,16)x(16,1) -> (48,1),
        # single bf16 pass with f32 accumulation.
        gh = jnp.dot(w_hh, h.astype(jnp.bfloat16),
                     preferred_element_type=jnp.float32)           # (48, 1)

        # Input-side gates: depend only on t -> off the serial h-chain
        # (b_hr / b_hz already folded into b_gi_col; b_hn kept separate).
        gi = x_ref[t] * w_i_col + b_gi_col                         # (48, 1)

        # Free sublane splits (offsets 0/16/32 are 8-aligned -> no lane rolls).
        rz = jax.nn.sigmoid(gi[0:2 * H, :] + gh[0:2 * H, :])       # (32, 1)
        r = rz[0:H, :]
        z = rz[H:2 * H, :]
        n = jnp.tanh(gi[2 * H:, :] + r * (gh[2 * H:, :] + b_hn))   # (16, 1)

        # z is ready well before n, so (1-z) and z*h are precomputed in the
        # shadow of the n chain; only one mul+add remain once n arrives.
        return (1.0 - z) * n + z * h

    h0 = jnp.zeros((H, 1), jnp.float32)
    if seq <= 64:
        # Fully static unroll: every index is a constant, the LLO scheduler
        # sees across iterations and gi / loop bookkeeping fall off the chain.
        h = h0
        for t in range(seq):
            h = step(t, h)
    else:
        h = lax.fori_loop(0, seq, step, h0, unroll=8)

    # Epilogue Linear(16,1) on VPU/XLU — skip a second MXU fill/drain.
    y_ref[...] = jnp.sum(h * w_out_col, axis=0, keepdims=True) + b_out


def init_params(key):
    """Deterministic init matching PyTorch default shapes for GRU(1,16)+Linear(16,1)."""
    H = HIDDEN
    ks = jax.random.split(key, 6)
    bound = 1.0 / jnp.sqrt(jnp.float32(H))
    w_ih = jax.random.uniform(ks[0], (3 * H, 1), jnp.float32, -bound, bound)
    w_hh = jax.random.uniform(ks[1], (3 * H, H), jnp.float32, -bound, bound)
    b_ih = jax.random.uniform(ks[2], (3 * H,), jnp.float32, -bound, bound)
    b_hh = jax.random.uniform(ks[3], (3 * H,), jnp.float32, -bound, bound)
    w_out = jax.random.uniform(ks[4], (1, H), jnp.float32, -bound, bound)
    b_out = jax.random.uniform(ks[5], (1,), jnp.float32, -bound, bound)
    return dict(w_ih=w_ih, w_hh=w_hh, b_ih=b_ih, b_hh=b_hh,
                w_out=w_out, b_out=b_out)


def very_simple_rnn_forward(x, params):
    """Pallas implementation of VerySimpleRNN.forward for a 1-D input x."""
    H = HIDDEN
    w_ih = params["w_ih"].astype(jnp.float32).reshape(G3)        # (48,)
    w_hh = params["w_hh"].astype(jnp.float32)                    # (48, 16)
    b_ih = params["b_ih"].astype(jnp.float32)                    # (48,)
    b_hh = params["b_hh"].astype(jnp.float32)                    # (48,)
    w_out = params["w_out"].astype(jnp.float32).reshape(H)       # (16,)
    b_out = params["b_out"].astype(jnp.float32).reshape(1)       # (1,)

    if x.size == 0:
        # Matches the torch branch: h = zeros(1, 16); out(h).squeeze()
        h = jnp.zeros((H,), jnp.float32)
        return jnp.sum(h * w_out) + b_out[0]

    x_flat = x.reshape(-1).astype(jnp.float32)                   # (seq,)
    seq = int(x_flat.shape[0])

    # ---- pack everything small into ONE leading-axis-stacked array --------
    # Fold b_hr/b_hz into the gi bias (b_hn must stay inside the r*(...) term).
    b_gi = jnp.concatenate([b_ih[:2 * H] + b_hh[:2 * H], b_ih[2 * H:]])   # (48,)
    misc = jnp.concatenate([b_hh[2 * H:], w_out, b_out,
                            jnp.zeros((H - 1,), jnp.float32)])            # (48,)
    vecs = jnp.stack([w_ih, b_gi, misc], axis=0)[..., None]               # (3, 48, 1)

    # Pre-cast hidden weights to bf16 once -> guaranteed single MXU pass.
    w_hh_bf16 = w_hh.astype(jnp.bfloat16)                                 # (48, 16)

    # Advisory cost hint so XLA doesn't mis-schedule around a ~µs custom call.
    flops = seq * (2 * G3 * H + 2 * G3 + 8 * H) + 4 * H
    transcendentals = seq * G3
    bytes_accessed = 2 * G3 * H + 4 * (3 * G3 + seq + 1)

    smem = pl.BlockSpec(memory_space=pltpu.MemorySpace.SMEM)
    vmem = pl.BlockSpec(memory_space=pltpu.MemorySpace.VMEM)
    out = pl.pallas_call(
        gru_linear_kernel,
        out_shape=jax.ShapeDtypeStruct((1, 1), jnp.float32),
        in_specs=[smem, vmem, vmem],
        out_specs=vmem,
        cost_estimate=pl.CostEstimate(flops=flops,
                                      transcendentals=transcendentals,
                                      bytes_accessed=bytes_accessed),
    )(x_flat, w_hh_bf16, vecs)
    return out[0, 0]


def reference_forward(x, params):
    """Pure-JAX f32 reference (mirrors torch.nn.GRU equations, gate order r,z,n)."""
    H = HIDDEN
    w_ih, w_hh = params["w_ih"], params["w_hh"]
    b_ih, b_hh = params["b_ih"], params["b_hh"]
    w_out, b_out = params["w_out"], params["b_out"]
    h = jnp.zeros((H,), jnp.float32)
    for t in range(x.shape[0]):
        x_t = x[t].reshape(1)
        gi = w_ih @ x_t + b_ih
        gh = w_hh @ h + b_hh
        r = jax.nn.sigmoid(gi[0:H] + gh[0:H])
        z = jax.nn.sigmoid(gi[H:2 * H] + gh[H:2 * H])
        n = jnp.tanh(gi[2 * H:3 * H] + r * gh[2 * H:3 * H])
        h = (1.0 - z) * n + z * h
    return (w_out @ h + b_out)[0]


if __name__ == "__main__":
    key = jax.random.PRNGKey(0)
    pkey, xkey = jax.random.split(key)
    params = init_params(pkey)

    seq = 8
    x = jax.random.normal(xkey, (seq,), jnp.float32)

    y = very_simple_rnn_forward(x, params)
    y = jax.block_until_ready(y)

    y_ref = reference_forward(x, params)
    # Tolerance loosened vs. the pure-f32 version because W_hh runs through a
    # single bf16 MXU pass (f32 accumulation); error is ~1e-3 relative.
    assert jnp.allclose(y, y_ref, atol=1e-2, rtol=1e-2), (y, y_ref)

    print("KERNEL_OK")
</pallas_src>

<mosaic_0001>
module attributes {stable_mosaic.version = 11 : i64} {
  func.func @gru_linear_kernel(%arg0: memref<8xf32, #tpu.memory_space<smem>>, %arg1: memref<48x16xbf16, #tpu.memory_space<vmem>>, %arg2: memref<3x48x1xf32, #tpu.memory_space<vmem>>, %arg3: memref<1x1xf32, #tpu.memory_space<vmem>>) attributes {dimension_semantics = [], scalar_prefetch = 0 : i64, scratch_operands = 0 : i64, tpu.core_type = #tpu.core_type<tc>} {
    %c0 = arith.constant 0 : index
    %c0_0 = arith.constant 0 : index
    %0 = vector.load %arg1[%c0, %c0_0] : memref<48x16xbf16, #tpu.memory_space<vmem>>, vector<48x16xbf16>
    %c0_1 = arith.constant 0 : index
    %c0_2 = arith.constant 0 : index
    %c0_3 = arith.constant 0 : index
    %1 = vector.load %arg2[%c0_1, %c0_2, %c0_3] : memref<3x48x1xf32, #tpu.memory_space<vmem>>, vector<1x48x1xf32>
    %2 = vector.shape_cast %1 : vector<1x48x1xf32> to vector<48x1xf32>
    %c1 = arith.constant 1 : index
    %c0_4 = arith.constant 0 : index
    %c0_5 = arith.constant 0 : index
    %3 = vector.load %arg2[%c1, %c0_4, %c0_5] : memref<3x48x1xf32, #tpu.memory_space<vmem>>, vector<1x48x1xf32>
    %4 = vector.shape_cast %3 : vector<1x48x1xf32> to vector<48x1xf32>
    %c2 = arith.constant 2 : index
    %c0_6 = arith.constant 0 : index
    %c0_7 = arith.constant 0 : index
    %5 = vector.load %arg2[%c2, %c0_6, %c0_7] : memref<3x48x1xf32, #tpu.memory_space<vmem>>, vector<1x48x1xf32>
    %6 = vector.shape_cast %5 : vector<1x48x1xf32> to vector<48x1xf32>
    %7 = vector.extract_strided_slice %6 {offsets = [0, 0], sizes = [16, 1], strides = [1, 1]} : vector<48x1xf32> to vector<16x1xf32>
    %8 = vector.extract_strided_slice %6 {offsets = [16, 0], sizes = [16, 1], strides = [1, 1]} : vector<48x1xf32> to vector<16x1xf32>
    %9 = vector.extract_strided_slice %6 {offsets = [32, 0], sizes = [1, 1], strides = [1, 1]} : vector<48x1xf32> to vector<1x1xf32>
    %cst = arith.constant 0.000000e+00 : f32
    %10 = vector.broadcast %cst : f32 to vector<16x1xf32>
    %11 = arith.truncf %10 : vector<16x1xf32> to vector<16x1xbf16>
    %cst_8 = arith.constant dense<0.000000e+00> : vector<48x1xf32>
    %12 = tpu.matmul %0, %11, %cst_8 {dimension_numbers = #tpu.dot_dimension_numbers<[1], [0], [0], [1], [0, 0, 1, 1], [], []>} : vector<48x16xbf16>, vector<16x1xbf16>, vector<48x1xf32> -> vector<48x1xf32>
    %c0_9 = arith.constant 0 : index
    %13 = memref.load %arg0[%c0_9] : memref<8xf32, #tpu.memory_space<smem>>
    %14 = vector.broadcast %13 : f32 to vector<48x1xf32>
    %15 = arith.mulf %14, %2 : vector<48x1xf32>
    %16 = arith.addf %15, %4 : vector<48x1xf32>
    %17 = vector.extract_strided_slice %16 {offsets = [0, 0], sizes = [32, 1], strides = [1, 1]} : vector<48x1xf32> to vector<32x1xf32>
    %18 = vector.extract_strided_slice %12 {offsets = [0, 0], sizes = [32, 1], strides = [1, 1]} : vector<48x1xf32> to vector<32x1xf32>
    %19 = arith.addf %17, %18 : vector<32x1xf32>
    %20 = arith.negf %19 : vector<32x1xf32>
    %21 = math.exp %20 : vector<32x1xf32>
    %cst_10 = arith.constant 1.000000e+00 : f32
    %22 = vector.broadcast %cst_10 : f32 to vector<32x1xf32>
    %23 = arith.addf %22, %21 : vector<32x1xf32>
    %24 = arith.divf %22, %23 : vector<32x1xf32>
    %25 = vector.extract_strided_slice %24 {offsets = [0, 0], sizes = [16, 1], strides = [1, 1]} : vector<32x1xf32> to vector<16x1xf32>
    %26 = vector.extract_strided_slice %24 {offsets = [16, 0], sizes = [16, 1], strides = [1, 1]} : vector<32x1xf32> to vector<16x1xf32>
    %27 = vector.extract_strided_slice %16 {offsets = [32, 0], sizes = [16, 1], strides = [1, 1]} : vector<48x1xf32> to vector<16x1xf32>
    %28 = vector.extract_strided_slice %12 {offsets = [32, 0], sizes = [16, 1], strides = [1, 1]} : vector<48x1xf32> to vector<16x1xf32>
    %29 = arith.addf %28, %7 : vector<16x1xf32>
    %30 = arith.mulf %25, %29 : vector<16x1xf32>
    %31 = arith.addf %27, %30 : vector<16x1xf32>
    %32 = math.tanh %31 : vector<16x1xf32>
    %cst_11 = arith.constant 1.000000e+00 : f32
    %33 = vector.broadcast %cst_11 : f32 to vector<16x1xf32>
    %34 = arith.subf %33, %26 : vector<16x1xf32>
    %35 = arith.mulf %34, %32 : vector<16x1xf32>
    %36 = arith.mulf %26, %10 : vector<16x1xf32>
    %37 = arith.addf %35, %36 : vector<16x1xf32>
    %38 = arith.truncf %37 : vector<16x1xf32> to vector<16x1xbf16>
    %cst_12 = arith.constant dense<0.000000e+00> : vector<48x1xf32>
    %39 = tpu.matmul %0, %38, %cst_12 {dimension_numbers = #tpu.dot_dimension_numbers<[1], [0], [0], [1], [0, 0, 1, 1], [], []>} : vector<48x16xbf16>, vector<16x1xbf16>, vector<48x1xf32> -> vector<48x1xf32>
    %c1_13 = arith.constant 1 : index
    %40 = memref.load %arg0[%c1_13] : memref<8xf32, #tpu.memory_space<smem>>
    %41 = vector.broadcast %40 : f32 to vector<48x1xf32>
    %42 = arith.mulf %41, %2 : vector<48x1xf32>
    %43 = arith.addf %42, %4 : vector<48x1xf32>
    %44 = vector.extract_strided_slice %43 {offsets = [0, 0], sizes = [32, 1], strides = [1, 1]} : vector<48x1xf32> to vector<32x1xf32>
    %45 = vector.extract_strided_slice %39 {offsets = [0, 0], sizes = [32, 1], strides = [1, 1]} : vector<48x1xf32> to vector<32x1xf32>
    %46 = arith.addf %44, %45 : vector<32x1xf32>
    %47 = arith.negf %46 : vector<32x1xf32>
    %48 = math.exp %47 : vector<32x1xf32>
    %cst_14 = arith.constant 1.000000e+00 : f32
    %49 = vector.broadcast %cst_14 : f32 to vector<32x1xf32>
    %50 = arith.addf %49, %48 : vector<32x1xf32>
    %51 = arith.divf %49, %50 : vector<32x1xf32>
    %52 = vector.extract_strided_slice %51 {offsets = [0, 0], sizes = [16, 1], strides = [1, 1]} : vector<32x1xf32> to vector<16x1xf32>
    %53 = vector.extract_strided_slice %51 {offsets = [16, 0], sizes = [16, 1], strides = [1, 1]} : vector<32x1xf32> to vector<16x1xf32>
    %54 = vector.extract_strided_slice %43 {offsets = [32, 0], sizes = [16, 1], strides = [1, 1]} : vector<48x1xf32> to vector<16x1xf32>
    %55 = vector.extract_strided_slice %39 {offsets = [32, 0], sizes = [16, 1], strides = [1, 1]} : vector<48x1xf32> to vector<16x1xf32>
    %56 = arith.addf %55, %7 : vector<16x1xf32>
    %57 = arith.mulf %52, %56 : vector<16x1xf32>
    %58 = arith.addf %54, %57 : vector<16x1xf32>
    %59 = math.tanh %58 : vector<16x1xf32>
    %cst_15 = arith.constant 1.000000e+00 : f32
    %60 = vector.broadcast %cst_15 : f32 to vector<16x1xf32>
    %61 = arith.subf %60, %53 : vector<16x1xf32>
    %62 = arith.mulf %61, %59 : vector<16x1xf32>
    %63 = arith.mulf %53, %37 : vector<16x1xf32>
    %64 = arith.addf %62, %63 : vector<16x1xf32>
    %65 = arith.truncf %64 : vector<16x1xf32> to vector<16x1xbf16>
    %cst_16 = arith.constant dense<0.000000e+00> : vector<48x1xf32>
    %66 = tpu.matmul %0, %65, %cst_16 {dimension_numbers = #tpu.dot_dimension_numbers<[1], [0], [0], [1], [0, 0, 1, 1], [], []>} : vector<48x16xbf16>, vector<16x1xbf16>, vector<48x1xf32> -> vector<48x1xf32>
    %c2_17 = arith.constant 2 : index
    %67 = memref.load %arg0[%c2_17] : memref<8xf32, #tpu.memory_space<smem>>
    %68 = vector.broadcast %67 : f32 to vector<48x1xf32>
    %69 = arith.mulf %68, %2 : vector<48x1xf32>
    %70 = arith.addf %69, %4 : vector<48x1xf32>
    %71 = vector.extract_strided_slice %70 {offsets = [0, 0], sizes = [32, 1], strides = [1, 1]} : vector<48x1xf32> to vector<32x1xf32>
    %72 = vector.extract_strided_slice %66 {offsets = [0, 0], sizes = [32, 1], strides = [1, 1]} : vector<48x1xf32> to vector<32x1xf32>
    %73 = arith.addf %71, %72 : vector<32x1xf32>
    %74 = arith.negf %73 : vector<32x1xf32>
    %75 = math.exp %74 : vector<32x1xf32>
    %cst_18 = arith.constant 1.000000e+00 : f32
    %76 = vector.broadcast %cst_18 : f32 to vector<32x1xf32>
    %77 = arith.addf %76, %75 : vector<32x1xf32>
    %78 = arith.divf %76, %77 : vector<32x1xf32>
    %79 = vector.extract_strided_slice %78 {offsets = [0, 0], sizes = [16, 1], strides = [1, 1]} : vector<32x1xf32> to vector<16x1xf32>
    %80 = vector.extract_strided_slice %78 {offsets = [16, 0], sizes = [16, 1], strides = [1, 1]} : vector<32x1xf32> to vector<16x1xf32>
    %81 = vector.extract_strided_slice %70 {offsets = [32, 0], sizes = [16, 1], strides = [1, 1]} : vector<48x1xf32> to vector<16x1xf32>
    %82 = vector.extract_strided_slice %66 {offsets = [32, 0], sizes = [16, 1], strides = [1, 1]} : vector<48x1xf32> to vector<16x1xf32>
    %83 = arith.addf %82, %7 : vector<16x1xf32>
    %84 = arith.mulf %79, %83 : vector<16x1xf32>
    %85 = arith.addf %81, %84 : vector<16x1xf32>
    %86 = math.tanh %85 : vector<16x1xf32>
    %cst_19 = arith.constant 1.000000e+00 : f32
    %87 = vector.broadcast %cst_19 : f32 to vector<16x1xf32>
    %88 = arith.subf %87, %80 : vector<16x1xf32>
    %89 = arith.mulf %88, %86 : vector<16x1xf32>
    %90 = arith.mulf %80, %64 : vector<16x1xf32>
    %91 = arith.addf %89, %90 : vector<16x1xf32>
    %92 = arith.truncf %91 : vector<16x1xf32> to vector<16x1xbf16>
    %cst_20 = arith.constant dense<0.000000e+00> : vector<48x1xf32>
    %93 = tpu.matmul %0, %92, %cst_20 {dimension_numbers = #tpu.dot_dimension_numbers<[1], [0], [0], [1], [0, 0, 1, 1], [], []>} : vector<48x16xbf16>, vector<16x1xbf16>, vector<48x1xf32> -> vector<48x1xf32>
    %c3 = arith.constant 3 : index
    %94 = memref.load %arg0[%c3] : memref<8xf32, #tpu.memory_space<smem>>
    %95 = vector.broadcast %94 : f32 to vector<48x1xf32>
    %96 = arith.mulf %95, %2 : vector<48x1xf32>
    %97 = arith.addf %96, %4 : vector<48x1xf32>
    %98 = vector.extract_strided_slice %97 {offsets = [0, 0], sizes = [32, 1], strides = [1, 1]} : vector<48x1xf32> to vector<32x1xf32>
    %99 = vector.extract_strided_slice %93 {offsets = [0, 0], sizes = [32, 1], strides = [1, 1]} : vector<48x1xf32> to vector<32x1xf32>
    %100 = arith.addf %98, %99 : vector<32x1xf32>
    %101 = arith.negf %100 : vector<32x1xf32>
    %102 = math.exp %101 : vector<32x1xf32>
    %cst_21 = arith.constant 1.000000e+00 : f32
    %103 = vector.broadcast %cst_21 : f32 to vector<32x1xf32>
    %104 = arith.addf %103, %102 : vector<32x1xf32>
    %105 = arith.divf %103, %104 : vector<32x1xf32>
    %106 = vector.extract_strided_slice %105 {offsets = [0, 0], sizes = [16, 1], strides = [1, 1]} : vector<32x1xf32> to vector<16x1xf32>
    %107 = vector.extract_strided_slice %105 {offsets = [16, 0], sizes = [16, 1], strides = [1, 1]} : vector<32x1xf32> to vector<16x1xf32>
    %108 = vector.extract_strided_slice %97 {offsets = [32, 0], sizes = [16, 1], strides = [1, 1]} : vector<48x1xf32> to vector<16x1xf32>
    %109 = vector.extract_strided_slice %93 {offsets = [32, 0], sizes = [16, 1], strides = [1, 1]} : vector<48x1xf32> to vector<16x1xf32>
    %110 = arith.addf %109, %7 : vector<16x1xf32>
    %111 = arith.mulf %106, %110 : vector<16x1xf32>
    %112 = arith.addf %108, %111 : vector<16x1xf32>
    %113 = math.tanh %112 : vector<16x1xf32>
    %cst_22 = arith.constant 1.000000e+00 : f32
    %114 = vector.broadcast %cst_22 : f32 to vector<16x1xf32>
    %115 = arith.subf %114, %107 : vector<16x1xf32>
    %116 = arith.mulf %115, %113 : vector<16x1xf32>
    %117 = arith.mulf %107, %91 : vector<16x1xf32>
    %118 = arith.addf %116, %117 : vector<16x1xf32>
    %119 = arith.truncf %118 : vector<16x1xf32> to vector<16x1xbf16>
    %cst_23 = arith.constant dense<0.000000e+00> : vector<48x1xf32>
    %120 = tpu.matmul %0, %119, %cst_23 {dimension_numbers = #tpu.dot_dimension_numbers<[1], [0], [0], [1], [0, 0, 1, 1], [], []>} : vector<48x16xbf16>, vector<16x1xbf16>, vector<48x1xf32> -> vector<48x1xf32>
    %c4 = arith.constant 4 : index
    %121 = memref.load %arg0[%c4] : memref<8xf32, #tpu.memory_space<smem>>
    %122 = vector.broadcast %121 : f32 to vector<48x1xf32>
    %123 = arith.mulf %122, %2 : vector<48x1xf32>
    %124 = arith.addf %123, %4 : vector<48x1xf32>
    %125 = vector.extract_strided_slice %124 {offsets = [0, 0], sizes = [32, 1], strides = [1, 1]} : vector<48x1xf32> to vector<32x1xf32>
    %126 = vector.extract_strided_slice %120 {offsets = [0, 0], sizes = [32, 1], strides = [1, 1]} : vector<48x1xf32> to vector<32x1xf32>
    %127 = arith.addf %125, %126 : vector<32x1xf32>
    %128 = arith.negf %127 : vector<32x1xf32>
    %129 = math.exp %128 : vector<32x1xf32>
    %cst_24 = arith.constant 1.000000e+00 : f32
    %130 = vector.broadcast %cst_24 : f32 to vector<32x1xf32>
    %131 = arith.addf %130, %129 : vector<32x1xf32>
    %132 = arith.divf %130, %131 : vector<32x1xf32>
    %133 = vector.extract_strided_slice %132 {offsets = [0, 0], sizes = [16, 1], strides = [1, 1]} : vector<32x1xf32> to vector<16x1xf32>
    %134 = vector.extract_strided_slice %132 {offsets = [16, 0], sizes = [16, 1], strides = [1, 1]} : vector<32x1xf32> to vector<16x1xf32>
    %135 = vector.extract_strided_slice %124 {offsets = [32, 0], sizes = [16, 1], strides = [1, 1]} : vector<48x1xf32> to vector<16x1xf32>
    %136 = vector.extract_strided_slice %120 {offsets = [32, 0], sizes = [16, 1], strides = [1, 1]} : vector<48x1xf32> to vector<16x1xf32>
    %137 = arith.addf %136, %7 : vector<16x1xf32>
    %138 = arith.mulf %133, %137 : vector<16x1xf32>
    %139 = arith.addf %135, %138 : vector<16x1xf32>
    %140 = math.tanh %139 : vector<16x1xf32>
    %cst_25 = arith.constant 1.000000e+00 : f32
    %141 = vector.broadcast %cst_25 : f32 to vector<16x1xf32>
    %142 = arith.subf %141, %134 : vector<16x1xf32>
    %143 = arith.mulf %142, %140 : vector<16x1xf32>
    %144 = arith.mulf %134, %118 : vector<16x1xf32>
    %145 = arith.addf %143, %144 : vector<16x1xf32>
    %146 = arith.truncf %145 : vector<16x1xf32> to vector<16x1xbf16>
    %cst_26 = arith.constant dense<0.000000e+00> : vector<48x1xf32>
    %147 = tpu.matmul %0, %146, %cst_26 {dimension_numbers = #tpu.dot_dimension_numbers<[1], [0], [0], [1], [0, 0, 1, 1], [], []>} : vector<48x16xbf16>, vector<16x1xbf16>, vector<48x1xf32> -> vector<48x1xf32>
    %c5 = arith.constant 5 : index
    %148 = memref.load %arg0[%c5] : memref<8xf32, #tpu.memory_space<smem>>
    %149 = vector.broadcast %148 : f32 to vector<48x1xf32>
    %150 = arith.mulf %149, %2 : vector<48x1xf32>
    %151 = arith.addf %150, %4 : vector<48x1xf32>
    %152 = vector.extract_strided_slice %151 {offsets = [0, 0], sizes = [32, 1], strides = [1, 1]} : vector<48x1xf32> to vector<32x1xf32>
    %153 = vector.extract_strided_slice %147 {offsets = [0, 0], sizes = [32, 1], strides = [1, 1]} : vector<48x1xf32> to vector<32x1xf32>
    %154 = arith.addf %152, %153 : vector<32x1xf32>
    %155 = arith.negf %154 : vector<32x1xf32>
    %156 = math.exp %155 : vector<32x1xf32>
    %cst_27 = arith.constant 1.000000e+00 : f32
    %157 = vector.broadcast %cst_27 : f32 to vector<32x1xf32>
    %158 = arith.addf %157, %156 : vector<32x1xf32>
    %159 = arith.divf %157, %158 : vector<32x1xf32>
    %160 = vector.extract_strided_slice %159 {offsets = [0, 0], sizes = [16, 1], strides = [1, 1]} : vector<32x1xf32> to vector<16x1xf32>
    %161 = vector.extract_strided_slice %159 {offsets = [16, 0], sizes = [16, 1], strides = [1, 1]} : vector<32x1xf32> to vector<16x1xf32>
    %162 = vector.extract_strided_slice %151 {offsets = [32, 0], sizes = [16, 1], strides = [1, 1]} : vector<48x1xf32> to vector<16x1xf32>
    %163 = vector.extract_strided_slice %147 {offsets = [32, 0], sizes = [16, 1], strides = [1, 1]} : vector<48x1xf32> to vector<16x1xf32>
    %164 = arith.addf %163, %7 : vector<16x1xf32>
    %165 = arith.mulf %160, %164 : vector<16x1xf32>
    %166 = arith.addf %162, %165 : vector<16x1xf32>
    %167 = math.tanh %166 : vector<16x1xf32>
    %cst_28 = arith.constant 1.000000e+00 : f32
    %168 = vector.broadcast %cst_28 : f32 to vector<16x1xf32>
    %169 = arith.subf %168, %161 : vector<16x1xf32>
    %170 = arith.mulf %169, %167 : vector<16x1xf32>
    %171 = arith.mulf %161, %145 : vector<16x1xf32>
    %172 = arith.addf %170, %171 : vector<16x1xf32>
    %173 = arith.truncf %172 : vector<16x1xf32> to vector<16x1xbf16>
    %cst_29 = arith.constant dense<0.000000e+00> : vector<48x1xf32>
    %174 = tpu.matmul %0, %173, %cst_29 {dimension_numbers = #tpu.dot_dimension_numbers<[1], [0], [0], [1], [0, 0, 1, 1], [], []>} : vector<48x16xbf16>, vector<16x1xbf16>, vector<48x1xf32> -> vector<48x1xf32>
    %c6 = arith.constant 6 : index
    %175 = memref.load %arg0[%c6] : memref<8xf32, #tpu.memory_space<smem>>
    %176 = vector.broadcast %175 : f32 to vector<48x1xf32>
    %177 = arith.mulf %176, %2 : vector<48x1xf32>
    %178 = arith.addf %177, %4 : vector<48x1xf32>
    %179 = vector.extract_strided_slice %178 {offsets = [0, 0], sizes = [32, 1], strides = [1, 1]} : vector<48x1xf32> to vector<32x1xf32>
    %180 = vector.extract_strided_slice %174 {offsets = [0, 0], sizes = [32, 1], strides = [1, 1]} : vector<48x1xf32> to vector<32x1xf32>
    %181 = arith.addf %179, %180 : vector<32x1xf32>
    %182 = arith.negf %181 : vector<32x1xf32>
    %183 = math.exp %182 : vector<32x1xf32>
    %cst_30 = arith.constant 1.000000e+00 : f32
    %184 = vector.broadcast %cst_30 : f32 to vector<32x1xf32>
    %185 = arith.addf %184, %183 : vector<32x1xf32>
    %186 = arith.divf %184, %185 : vector<32x1xf32>
    %187 = vector.extract_strided_slice %186 {offsets = [0, 0], sizes = [16, 1], strides = [1, 1]} : vector<32x1xf32> to vector<16x1xf32>
    %188 = vector.extract_strided_slice %186 {offsets = [16, 0], sizes = [16, 1], strides = [1, 1]} : vector<32x1xf32> to vector<16x1xf32>
    %189 = vector.extract_strided_slice %178 {offsets = [32, 0], sizes = [16, 1], strides = [1, 1]} : vector<48x1xf32> to vector<16x1xf32>
    %190 = vector.extract_strided_slice %174 {offsets = [32, 0], sizes = [16, 1], strides = [1, 1]} : vector<48x1xf32> to vector<16x1xf32>
    %191 = arith.addf %190, %7 : vector<16x1xf32>
    %192 = arith.mulf %187, %191 : vector<16x1xf32>
    %193 = arith.addf %189, %192 : vector<16x1xf32>
    %194 = math.tanh %193 : vector<16x1xf32>
    %cst_31 = arith.constant 1.000000e+00 : f32
    %195 = vector.broadcast %cst_31 : f32 to vector<16x1xf32>
    %196 = arith.subf %195, %188 : vector<16x1xf32>
    %197 = arith.mulf %196, %194 : vector<16x1xf32>
    %198 = arith.mulf %188, %172 : vector<16x1xf32>
    %199 = arith.addf %197, %198 : vector<16x1xf32>
    %200 = arith.truncf %199 : vector<16x1xf32> to vector<16x1xbf16>
    %cst_32 = arith.constant dense<0.000000e+00> : vector<48x1xf32>
    %201 = tpu.matmul %0, %200, %cst_32 {dimension_numbers = #tpu.dot_dimension_numbers<[1], [0], [0], [1], [0, 0, 1, 1], [], []>} : vector<48x16xbf16>, vector<16x1xbf16>, vector<48x1xf32> -> vector<48x1xf32>
    %c7 = arith.constant 7 : index
    %202 = memref.load %arg0[%c7] : memref<8xf32, #tpu.memory_space<smem>>
    %203 = vector.broadcast %202 : f32 to vector<48x1xf32>
    %204 = arith.mulf %203, %2 : vector<48x1xf32>
    %205 = arith.addf %204, %4 : vector<48x1xf32>
    %206 = vector.extract_strided_slice %205 {offsets = [0, 0], sizes = [32, 1], strides = [1, 1]} : vector<48x1xf32> to vector<32x1xf32>
    %207 = vector.extract_strided_slice %201 {offsets = [0, 0], sizes = [32, 1], strides = [1, 1]} : vector<48x1xf32> to vector<32x1xf32>
    %208 = arith.addf %206, %207 : vector<32x1xf32>
    %209 = arith.negf %208 : vector<32x1xf32>
    %210 = math.exp %209 : vector<32x1xf32>
    %cst_33 = arith.constant 1.000000e+00 : f32
    %211 = vector.broadcast %cst_33 : f32 to vector<32x1xf32>
    %212 = arith.addf %211, %210 : vector<32x1xf32>
    %213 = arith.divf %211, %212 : vector<32x1xf32>
    %214 = vector.extract_strided_slice %213 {offsets = [0, 0], sizes = [16, 1], strides = [1, 1]} : vector<32x1xf32> to vector<16x1xf32>
    %215 = vector.extract_strided_slice %213 {offsets = [16, 0], sizes = [16, 1], strides = [1, 1]} : vector<32x1xf32> to vector<16x1xf32>
    %216 = vector.extract_strided_slice %205 {offsets = [32, 0], sizes = [16, 1], strides = [1, 1]} : vector<48x1xf32> to vector<16x1xf32>
    %217 = vector.extract_strided_slice %201 {offsets = [32, 0], sizes = [16, 1], strides = [1, 1]} : vector<48x1xf32> to vector<16x1xf32>
    %218 = arith.addf %217, %7 : vector<16x1xf32>
    %219 = arith.mulf %214, %218 : vector<16x1xf32>
    %220 = arith.addf %216, %219 : vector<16x1xf32>
    %221 = math.tanh %220 : vector<16x1xf32>
    %cst_34 = arith.constant 1.000000e+00 : f32
    %222 = vector.broadcast %cst_34 : f32 to vector<16x1xf32>
    %223 = arith.subf %222, %215 : vector<16x1xf32>
    %224 = arith.mulf %223, %221 : vector<16x1xf32>
    %225 = arith.mulf %215, %199 : vector<16x1xf32>
    %226 = arith.addf %224, %225 : vector<16x1xf32>
    %227 = arith.mulf %226, %8 : vector<16x1xf32>
    %cst_35 = arith.constant dense<0.000000e+00> : vector<1xf32>
    %228 = vector.multi_reduction <add>, %227, %cst_35 [0] : vector<16x1xf32> to vector<1xf32>
    %229 = vector.shape_cast %228 : vector<1xf32> to vector<1x1xf32>
    %230 = arith.addf %229, %9 : vector<1x1xf32>
    %c0_36 = arith.constant 0 : index
    %c0_37 = arith.constant 0 : index
    %231 = vector.load %arg3[%c0_36, %c0_37] : memref<1x1xf32, #tpu.memory_space<vmem>>, vector<1x1xf32>
    tpu.vector_store %arg3[%c0_36, %c0_37], %230 {strides = array<i32>} : memref<1x1xf32, #tpu.memory_space<vmem>>, vector<1x1xf32>,
    return
  }
}

</mosaic_0001>

<bundles_post_ra>
// kernel: tpu_custom_call.1
= control target key start
LH: loop header
LB: loop body
LE: loop exit
PB: predicated region body
PF: predicated region fallthrough
CT: control target
= control target key end

     0   :  { %8 = vsyncpa [#allocation4], 0  ;;  %s1920_s0 = inlined_call_operand.vmem [shape: f32[8], index: 0, kind: input, shape index: {}]   ;;  %s1921_s1 = inlined_call_operand.vmem [shape: bf16[48,16], index: 1, kind: input, shape index: {}]   ;;  %s1922_s2 = inlined_call_operand.vmem [shape: f32[3,48,1], index: 2, kind: input, shape index: {}]   ;;  %s1923_s3 = inlined_call_operand.hbm [shape: f32[1,1], index: 3, kind: output, shape index: {}]  }
   0x1   :  { %9 = vsyncpa [#allocation3], 0  ;;  %s16_s14 = sshll.u32 %s1920_s0, 4  ;;  %s17_s14 = int_to_ptr.vmem [resolvable:$true] %s16_s14 }
   0x2   :  { %s1442_s15 = scalar_lea.vmem %s17_s14, 16  ;;  %p1447_p1 = scmp.lt.s32.totalorder %s17_s14, %s17_s14 }
   0x3   :  { %p1443_p0 = scmp.ne.s32.totalorder %s17_s14, %s1442_s15  ;;  %p1448_p2 = scmp.lt.s32.totalorder %s1442_s15, %s1442_s15 }
   0x5   :  { %p1449_p3 = por %p1448_p2, %p1447_p1 }
   0x7   :  { %p1450_p4 = pnand %p1449_p3, %p1443_p0 }
   0x9   :  { %1453 = shalt.err (!%p1450_p4)
}
   0xa   :  { %s1480_s16 = smov [#allocation2]  }
   0xb   :  { %19 = dma.vmem_to_smem %s17_s14, 16, %s1480_s16, [#allocation4]  }
   0xc   :  { %1476 = dma.done.wait [#allocation4], 16  }
   0xd   :  { %1477 = vsyncadd [#allocation4], 4294967280 }
   0xe   :  { %27 = sfence }
   0xf   :  { %v1481_v0 = vmov 0.0   ;;  %vm1482_vm0 = vmmov 0   ;;  %v1514_v1 = vld [vmem:[%s1921_s1] sm:$0xff]   ;;  %vm69_vm1 = vcmask 130048   ;;  %v1483_v2 = vmov 0   ;;  %v1527_v3 = vld [vmem:[%s1921_s1 + $0x8] sm:$0xff]  }
  0x10   :  { %1145 = vmatprep.subr.bf16.mxu0 %v1481_v0  ;;  %1147 = vmatprep.mubr.msk.bf16.mxu0 %vm1482_vm0, %v1481_v0  ;;  %v1536_v4 = vld [vmem:[%s1921_s1 + $0x10] sm:$0xff]   ;;  %s136_s22 = sld [smem:[#allocation2]]  ;;  %v1545_v5 = vld [vmem:[%s1922_s2] sm:$0xff]  ;;  %v1550_v7 = vld [vmem:[%s1922_s2 + $0x8] sm:$0xff]  ;;  %s1060_s23 = sld [smem:[#allocation2 + $0x1]]  ;;  %vm1008_vm2 = vcmask 7168  }
  0x11   :  { %1146 = vmatpush3.bf16.msra.mxu0 %v1483_v2  ;;  %1159 = vmatprep.subr.bf16.mxu1 %v1481_v0  ;;  %v1556_v9 = vld [vmem:[%s1922_s2 + $0x30] sm:$0xff]  ;;  %v1562_v11 = vld [vmem:[%s1922_s2 + $0x38] sm:$0xff]  ;;  %v1580_v21 = vld [vmem:[%s1922_s2 + $0x40] sm:$0xff]  ;;  %s1068_s24 = sld [smem:[#allocation2 + $0x2]]  ;;  %s1076_s25 = sld [smem:[#allocation2 + $0x3]]  ;;  %vm1019_vm3 = vcmask 0  }
  0x12   :  { %1161 = vmatprep.mubr.msk.bf16.mxu1 %vm1482_vm0, %v1481_v0  ;;  %1173 = vmatprep.subr.bf16.mxu0 %v1481_v0  ;;  %v1568_v13 = vld [vmem:[%s1922_s2 + $0x10] sm:$0xff]  ;;  %v1574_v16 = vld [vmem:[%s1922_s2 + $0x18] sm:$0xff]  ;;  %v1586_v26 = vld [vmem:[%s1922_s2 + $0x48] sm:$0xff]  ;;  %s1084_s26 = sld [smem:[#allocation2 + $0x4]]  ;;  %s1092_s27 = sld [smem:[#allocation2 + $0x5]] }
  0x13   :  { %v1593_v46 = vld [vmem:[%s1922_s2 + $0x20] sm:$0xff]  ;;  %v1603_v48 = vld [vmem:[%s1922_s2 + $0x28] sm:$0xff]  ;;  %v1609_v52 = vld [vmem:[%s1922_s2 + $0x50] sm:$0xff]  ;;  %s1100_s28 = sld [smem:[#allocation2 + $0x6]]  ;;  %s1108_s8 = sld [smem:[#allocation2 + $0x7]] }
  0x14   :  { %1148 = vmatmul.mubr.msk.bf16.vlgmr.msra.gmra.mrb[0].mxu0 %vm69_vm1, %v1514_v1  ;;  %v1598_v47 = vld [vmem:[%s1922_s2 + $0x60] sm:$0xff]  ;;  %v1616_v56 = vld [vmem:[%s1922_s2 + $0x58] sm:$0xff]  ;;  %v1621_v57 = vld [vmem:[%s1922_s2 + $0x68] sm:$0xff]  ;;  %s1484_s14 = smov [#allocation5]  }
  0x15   :  { %1151 = vmatprep.mubr.msk.bf16.mxu0 %vm1482_vm0, %v1481_v0 }
  0x16   :  { %v137_v6 = vstv %s136_s22 }
  0x17   :  { %v138_v8 = vmul.f32 %v137_v6, %v1545_v5  ;;  %v139_v10 = vmul.f32 %v137_v6, %v1550_v7  ;;  %v140_v19 = vmul.f32 %v137_v6, %v1568_v13  ;;  %v141_v25 = vmul.f32 %v137_v6, %v1574_v16 }
  0x18   :  { %v142_v50 = vmul.f32 %v137_v6, %v1593_v46  ;;  %v143_v55 = vmul.f32 %v137_v6, %v1603_v48 }
  0x19   :  { %v144_v12 = vadd.f32 %v1556_v9, %v138_v8  ;;  %v145_v14 = vadd.f32 %v1562_v11, %v139_v10  ;;  %v146_v28 = vadd.f32 %v1580_v21, %v140_v19  ;;  %v147_v29 = vadd.f32 %v1586_v26, %v141_v25 }
  0x1a   :  { %v148_v59 = vadd.f32 %v1609_v52, %v142_v50  ;;  %v149_v62 = vadd.f32 %v1616_v56, %v143_v55 }
  0x1c   :  { %1152 = vmatmul.mubr.msk.bf16.gmra.mrb[4].mxu0 %vm69_vm1, %v1527_v3 }
  0x1d   :  { %1155 = vmatprep.mubr.msk.bf16.mxu0 %vm1482_vm0, %v1481_v0 }
  0x24   :  { %1156 = vmatmul.mubr.msk.bf16.gmra.mrb[8].mxu0 %vm69_vm1, %v1536_v4 }
  0x25   :  { %1175 = vmatprep.mubr.msk.bf16.mxu0 %vm1482_vm0, %v1481_v0 }
  0xe7   :  { %v113_v15 = vpop.f32.mrb[0].mxu0 }
  0xe8   :  { %v150_v17 = vadd.f32 %v144_v12, %v113_v15  ;;  %v1149_v18 = vpop.f32.mrb[1].mxu0 }
  0xe9   :  { %v116_v20 = vpop.f32.mrb[2].mxu0 }
  0xea   :  { %v1053_v22 = vmul.f32 -1.442695, %v150_v17  ;;  %v151_v23 = vadd.f32 %v145_v14, %v116_v20  ;;  %v1150_v24 = vpop.f32.mrb[3].mxu0 }
  0xec   :  { %1265 = vpow2.f32 %v1053_v22  ;;  %v1054_v27 = vmul.f32 -1.442695, %v151_v23 }
  0xee   :  { %1267 = vpow2.f32 %v1054_v27 }
  0xef   :  { %v121_v30 = vpop.f32.mrb[4].mxu0 }
  0xf0   :  { %v152_v31 = vadd.f32 %v146_v28, %v121_v30  ;;  %v1153_v32 = vpop.f32.mrb[5].mxu0 }
  0xf1   :  { %v124_v33 = vpop.f32.mrb[6].mxu0 }
  0xf2   :  { %v1055_v34 = vmul.f32 -1.442695, %v152_v31  ;;  %v153_v35 = vadd.f32 %v147_v29, %v124_v33  ;;  %v1154_v36 = vpop.f32.mrb[7].mxu0  ;;  %v253_v29 = vstv %s1060_s23 }
  0xf3   :  { %v254_v30 = vmul.f32 %v253_v29, %v1545_v5  ;;  %v255_v31 = vmul.f32 %v253_v29, %v1550_v7 }
  0xf4   :  { %1269 = vpow2.f32 %v1055_v34  ;;  %v1056_v37 = vmul.f32 -1.442695, %v153_v35 }
  0xf5   :  { %v260_v32 = vadd.f32 %v1556_v9, %v254_v30  ;;  %v261_v33 = vadd.f32 %v1562_v11, %v255_v31 }
  0xf6   :  { %v1266_v38 = vpop.eup %1265  ;;  %1271 = vpow2.f32 %v1056_v37  ;;  %v256_v37 = vmul.f32 %v253_v29, %v1568_v13 }
  0xf7   :  { %v166_v39 = vadd.f32 1.0, %v1266_v38  ;;  %v129_v40 = vpop.f32.mrb[8].mxu0 }
  0xf8   :  { %v1268_v41 = vpop.eup %1267  ;;  %v1157_v42 = vpop.f32.mrb[9].mxu0  ;;  %v178_v54 = vadd.f32 %v1598_v47, %v129_v40 }
  0xf9   :  { %1273 = vrcp.f32 %v166_v39  ;;  %v167_v43 = vadd.f32 1.0, %v1268_v41  ;;  %v132_v44 = vpop.f32.mrb[10].mxu0  ;;  %v257_v42 = vmul.f32 %v253_v29, %v1574_v16 }
  0xfa   :  { %v1158_v45 = vpop.f32.mrb[11].mxu0  ;;  %v179_v63 = vadd.f32 %v1621_v57, %v132_v44  ;;  %v262_v44 = vadd.f32 %v1580_v21, %v256_v37 }
  0xfb   :  { %1275 = vrcp.f32 %v167_v43  ;;  %v263_v45 = vadd.f32 %v1586_v26, %v257_v42 }
  0xfe   :  { %v1270_v49 = vpop.eup %1269 }
  0xff   :  { %v168_v51 = vadd.f32 1.0, %v1270_v49 }
 0x100   :  { %v1272_v53 = vpop.eup %1271 }
 0x101   :  { %1277 = vrcp.f32 %v168_v51  ;;  %v169_v58 = vadd.f32 1.0, %v1272_v53 }
 0x103   :  { %v1274_v60 = vpop.eup %1273  ;;  %1279 = vrcp.f32 %v169_v58 }
 0x104   :  { %v180_v61 = vmul.f32 %v1274_v60, %v178_v54 }
 0x105   :  { %v1276_v2 = vpop.eup %1275 }
 0x106   :  { %v182_v6 = vadd.f32 %v180_v61, %v148_v59  ;;  %v181_v8 = vmul.f32 %v1276_v2, %v179_v63 }
 0x108   :  { %1281 = vtanh.f32 %v182_v6  ;;  %v183_v10 = vadd.f32 %v181_v8, %v149_v62 }
 0x10a   :  { %1283 = vtanh.f32 %v183_v10 }
 0x10b   :  { %v1278_v12 = vpop.eup %1277 }
 0x10c   :  { %v186_v14 = vsub.f32 1.0, %v1278_v12  ;;  %v190_v20 = vmul.f32 0.0, %v1278_v12 }
 0x10d   :  { %v1280_v15 = vpop.eup %1279 }
 0x10e   :  { %v187_v18 = vsub.f32 1.0, %v1280_v15  ;;  %v191_v24 = vmul.f32 0.0, %v1280_v15 }
 0x112   :  { %v1282_v17 = vpop.eup %1281 }
 0x113   :  { %v188_v19 = vmul.f32 %v1282_v17, %v186_v14  ;;  %v258_v14 = vmul.f32 %v253_v29, %v1593_v46 }
 0x114   :  { %v1284_v22 = vpop.eup %1283 }
 0x115   :  { %v189_v23 = vmul.f32 %v1284_v22, %v187_v18  ;;  %v1626_v25 = vadd.f32 %v190_v20, %v188_v19  ;;  %v259_v19 = vmul.f32 %v253_v29, %v1603_v48  ;;  %v264_v20 = vadd.f32 %v1609_v52, %v258_v14 }
 0x117   :  { %v1628_v27 = vadd.f32 %v191_v24, %v189_v23 }
 0x119   :  { %v194_v28 = vpack.c.bf16 %v1628_v27, %v1626_v25 }
 0x11b   :  { %1160 = vmatpush3.bf16.msra.mxu1 %v194_v28  ;;  %v265_v28 = vadd.f32 %v1616_v56, %v259_v19 }
 0x11c   :  { %1187 = vmatprep.subr.bf16.mxu1 %v1481_v0 }
 0x11e   :  { %1162 = vmatmul.mubr.msk.bf16.vlgmr.msra.gmra.mrb[0].mxu1 %vm69_vm1, %v1514_v1 }
 0x11f   :  { %1165 = vmatprep.mubr.msk.bf16.mxu1 %vm1482_vm0, %v1481_v0 }
 0x126   :  { %1166 = vmatmul.mubr.msk.bf16.gmra.mrb[4].mxu1 %vm69_vm1, %v1527_v3 }
 0x127   :  { %1169 = vmatprep.mubr.msk.bf16.mxu1 %vm1482_vm0, %v1481_v0 }
 0x12e   :  { %1170 = vmatmul.mubr.msk.bf16.gmra.mrb[8].mxu1 %vm69_vm1, %v1536_v4 }
 0x12f   :  { %1189 = vmatprep.mubr.msk.bf16.mxu1 %vm1482_vm0, %v1481_v0 }
 0x1f1   :  { %v229_v34 = vpop.f32.mrb[0].mxu1 }
 0x1f2   :  { %v266_v35 = vadd.f32 %v260_v32, %v229_v34  ;;  %v1163_v36 = vpop.f32.mrb[1].mxu1 }
 0x1f3   :  { %v232_v38 = vpop.f32.mrb[2].mxu1 }
 0x1f4   :  { %v1061_v39 = vmul.f32 -1.442695, %v266_v35  ;;  %v267_v40 = vadd.f32 %v261_v33, %v232_v38  ;;  %v1164_v41 = vpop.f32.mrb[3].mxu1 }
 0x1f6   :  { %1285 = vpow2.f32 %v1061_v39  ;;  %v1062_v43 = vmul.f32 -1.442695, %v267_v40 }
 0x1f8   :  { %1287 = vpow2.f32 %v1062_v43 }
 0x1f9   :  { %v237_v49 = vpop.f32.mrb[4].mxu1 }
 0x1fa   :  { %v268_v50 = vadd.f32 %v262_v44, %v237_v49  ;;  %v1167_v51 = vpop.f32.mrb[5].mxu1 }
 0x1fb   :  { %v240_v53 = vpop.f32.mrb[6].mxu1 }
 0x1fc   :  { %v1063_v54 = vmul.f32 -1.442695, %v268_v50  ;;  %v269_v55 = vadd.f32 %v263_v45, %v240_v53  ;;  %v1168_v58 = vpop.f32.mrb[7].mxu1 }
 0x1fe   :  { %1289 = vpow2.f32 %v1063_v54  ;;  %v1064_v59 = vmul.f32 -1.442695, %v269_v55 }
 0x200   :  { %v1286_v60 = vpop.eup %1285  ;;  %1291 = vpow2.f32 %v1064_v59 }
 0x201   :  { %v282_v61 = vadd.f32 1.0, %v1286_v60  ;;  %v245_v62 = vpop.f32.mrb[8].mxu1 }
 0x202   :  { %v1288_v63 = vpop.eup %1287  ;;  %v1171_v2 = vpop.f32.mrb[9].mxu1  ;;  %v294_v18 = vadd.f32 %v1598_v47, %v245_v62 }
 0x203   :  { %1293 = vrcp.f32 %v282_v61  ;;  %v283_v6 = vadd.f32 1.0, %v1288_v63  ;;  %v248_v8 = vpop.f32.mrb[10].mxu1 }
 0x204   :  { %v1172_v10 = vpop.f32.mrb[11].mxu1  ;;  %v295_v30 = vadd.f32 %v1621_v57, %v248_v8 }
 0x205   :  { %1295 = vrcp.f32 %v283_v6 }
 0x208   :  { %v1290_v12 = vpop.eup %1289 }
 0x209   :  { %v284_v17 = vadd.f32 1.0, %v1290_v12 }
 0x20a   :  { %v1292_v15 = vpop.eup %1291 }
 0x20b   :  { %v285_v23 = vadd.f32 1.0, %v1292_v15  ;;  %1297 = vrcp.f32 %v284_v17 }
 0x20d   :  { %v1294_v22 = vpop.eup %1293  ;;  %1299 = vrcp.f32 %v285_v23 }
 0x20e   :  { %v296_v24 = vmul.f32 %v1294_v22, %v294_v18 }
 0x20f   :  { %v1296_v31 = vpop.eup %1295 }
 0x210   :  { %v298_v32 = vadd.f32 %v296_v24, %v264_v20  ;;  %v297_v33 = vmul.f32 %v1296_v31, %v295_v30 }
 0x212   :  { %1301 = vtanh.f32 %v298_v32  ;;  %v299_v34 = vadd.f32 %v297_v33, %v265_v28 }
 0x214   :  { %1303 = vtanh.f32 %v299_v34 }
 0x215   :  { %v1298_v35 = vpop.eup %1297 }
 0x216   :  { %v302_v36 = vsub.f32 1.0, %v1298_v35  ;;  %v306_v40 = vmul.f32 %v1298_v35, %v1626_v25  ;;  %v369_v25 = vstv %s1068_s24 }
 0x217   :  { %v1300_v29 = vpop.eup %1299  ;;  %v371_v50 = vmul.f32 %v369_v25, %v1550_v7  ;;  %v372_v59 = vmul.f32 %v369_v25, %v1568_v13  ;;  %v373_v2 = vmul.f32 %v369_v25, %v1574_v16 }
 0x218   :  { %v303_v38 = vsub.f32 1.0, %v1300_v29  ;;  %v307_v43 = vmul.f32 %v1300_v29, %v1628_v27  ;;  %v370_v27 = vmul.f32 %v369_v25, %v1545_v5 }
 0x219   :  { %v377_v53 = vadd.f32 %v1562_v11, %v371_v50  ;;  %v378_v8 = vadd.f32 %v1580_v21, %v372_v59  ;;  %v379_v10 = vadd.f32 %v1586_v26, %v373_v2 }
 0x21a   :  { %v376_v51 = vadd.f32 %v1556_v9, %v370_v27 }
 0x21c   :  { %v1302_v37 = vpop.eup %1301 }
 0x21d   :  { %v304_v39 = vmul.f32 %v1302_v37, %v302_v36  ;;  %v374_v36 = vmul.f32 %v369_v25, %v1593_v46 }
 0x21e   :  { %v1304_v41 = vpop.eup %1303 }
 0x21f   :  { %v305_v42 = vmul.f32 %v1304_v41, %v303_v38  ;;  %v1661_v44 = vadd.f32 %v306_v40, %v304_v39  ;;  %v375_v39 = vmul.f32 %v369_v25, %v1603_v48  ;;  %v380_v40 = vadd.f32 %v1609_v52, %v374_v36 }
 0x221   :  { %v1663_v45 = vadd.f32 %v307_v43, %v305_v42 }
 0x223   :  { %v310_v49 = vpack.c.bf16 %v1663_v45, %v1661_v44 }
 0x225   :  { %1174 = vmatpush3.bf16.msra.mxu0 %v310_v49  ;;  %v381_v49 = vadd.f32 %v1616_v56, %v375_v39 }
 0x226   :  { %1201 = vmatprep.subr.bf16.mxu0 %v1481_v0 }
 0x228   :  { %1176 = vmatmul.mubr.msk.bf16.vlgmr.msra.gmra.mrb[12].mxu0 %vm69_vm1, %v1514_v1 }
 0x229   :  { %1179 = vmatprep.mubr.msk.bf16.mxu0 %vm1482_vm0, %v1481_v0 }
 0x230   :  { %1180 = vmatmul.mubr.msk.bf16.gmra.mrb[16].mxu0 %vm69_vm1, %v1527_v3 }
 0x231   :  { %1183 = vmatprep.mubr.msk.bf16.mxu0 %vm1482_vm0, %v1481_v0 }
 0x238   :  { %1184 = vmatmul.mubr.msk.bf16.gmra.mrb[20].mxu0 %vm69_vm1, %v1536_v4 }
 0x239   :  { %1203 = vmatprep.mubr.msk.bf16.mxu0 %vm1482_vm0, %v1481_v0 }
 0x2fb   :  { %v345_v54 = vpop.f32.mrb[12].mxu0 }
 0x2fc   :  { %v382_v55 = vadd.f32 %v376_v51, %v345_v54  ;;  %v1177_v58 = vpop.f32.mrb[13].mxu0 }
 0x2fd   :  { %v348_v60 = vpop.f32.mrb[14].mxu0 }
 0x2fe   :  { %v1069_v61 = vmul.f32 -1.442695, %v382_v55  ;;  %v383_v62 = vadd.f32 %v377_v53, %v348_v60  ;;  %v1178_v63 = vpop.f32.mrb[15].mxu0 }
 0x300   :  { %1305 = vpow2.f32 %v1069_v61  ;;  %v1070_v6 = vmul.f32 -1.442695, %v383_v62 }
 0x302   :  { %1307 = vpow2.f32 %v1070_v6 }
 0x303   :  { %v353_v12 = vpop.f32.mrb[16].mxu0 }
 0x304   :  { %v384_v14 = vadd.f32 %v378_v8, %v353_v12  ;;  %v1181_v15 = vpop.f32.mrb[17].mxu0 }
 0x305   :  { %v356_v17 = vpop.f32.mrb[18].mxu0 }
 0x306   :  { %v1071_v18 = vmul.f32 -1.442695, %v384_v14  ;;  %v385_v19 = vadd.f32 %v379_v10, %v356_v17  ;;  %v1182_v20 = vpop.f32.mrb[19].mxu0 }
 0x308   :  { %1309 = vpow2.f32 %v1071_v18  ;;  %v1072_v22 = vmul.f32 -1.442695, %v385_v19 }
 0x30a   :  { %v1306_v23 = vpop.eup %1305  ;;  %1311 = vpow2.f32 %v1072_v22 }
 0x30b   :  { %v398_v24 = vadd.f32 1.0, %v1306_v23  ;;  %v361_v28 = vpop.f32.mrb[20].mxu0 }
 0x30c   :  { %v1308_v30 = vpop.eup %1307  ;;  %v1185_v31 = vpop.f32.mrb[21].mxu0  ;;  %v410_v38 = vadd.f32 %v1598_v47, %v361_v28 }
 0x30d   :  { %1313 = vrcp.f32 %v398_v24  ;;  %v399_v32 = vadd.f32 1.0, %v1308_v30  ;;  %v364_v33 = vpop.f32.mrb[22].mxu0 }
 0x30e   :  { %v1186_v34 = vpop.f32.mrb[23].mxu0  ;;  %v411_v27 = vadd.f32 %v1621_v57, %v364_v33 }
 0x30f   :  { %1315 = vrcp.f32 %v399_v32 }
 0x312   :  { %v1310_v35 = vpop.eup %1309 }
 0x313   :  { %v400_v37 = vadd.f32 1.0, %v1310_v35 }
 0x314   :  { %v1312_v29 = vpop.eup %1311 }
 0x315   :  { %v401_v42 = vadd.f32 1.0, %v1312_v29  ;;  %1317 = vrcp.f32 %v400_v37 }
 0x317   :  { %v1314_v41 = vpop.eup %1313  ;;  %1319 = vrcp.f32 %v401_v42 }
 0x318   :  { %v412_v43 = vmul.f32 %v1314_v41, %v410_v38 }
 0x319   :  { %v1316_v50 = vpop.eup %1315 }
 0x31a   :  { %v414_v51 = vadd.f32 %v412_v43, %v380_v40  ;;  %v413_v53 = vmul.f32 %v1316_v50, %v411_v27 }
 0x31c   :  { %1321 = vtanh.f32 %v414_v51  ;;  %v415_v54 = vadd.f32 %v413_v53, %v381_v49 }
 0x31e   :  { %1323 = vtanh.f32 %v415_v54 }
 0x31f   :  { %v1318_v55 = vpop.eup %1317 }
 0x320   :  { %v418_v58 = vsub.f32 1.0, %v1318_v55  ;;  %v422_v62 = vmul.f32 %v1318_v55, %v1661_v44  ;;  %v485_v44 = vstv %s1076_s25 }
 0x321   :  { %v1320_v25 = vpop.eup %1319  ;;  %v487_v14 = vmul.f32 %v485_v44, %v1550_v7  ;;  %v488_v22 = vmul.f32 %v485_v44, %v1568_v13  ;;  %v489_v31 = vmul.f32 %v485_v44, %v1574_v16 }
 0x322   :  { %v419_v60 = vsub.f32 1.0, %v1320_v25  ;;  %v423_v6 = vmul.f32 %v1320_v25, %v1663_v45  ;;  %v486_v45 = vmul.f32 %v485_v44, %v1545_v5 }
 0x323   :  { %v493_v17 = vadd.f32 %v1562_v11, %v487_v14  ;;  %v494_v33 = vadd.f32 %v1580_v21, %v488_v22  ;;  %v495_v34 = vadd.f32 %v1586_v26, %v489_v31 }
 0x324   :  { %v492_v15 = vadd.f32 %v1556_v9, %v486_v45 }
 0x326   :  { %v1322_v59 = vpop.eup %1321 }
 0x327   :  { %v420_v61 = vmul.f32 %v1322_v59, %v418_v58  ;;  %v490_v58 = vmul.f32 %v485_v44, %v1593_v46 }
 0x328   :  { %v1324_v63 = vpop.eup %1323 }
 0x329   :  { %v421_v2 = vmul.f32 %v1324_v63, %v419_v60  ;;  %v1696_v8 = vadd.f32 %v422_v62, %v420_v61  ;;  %v491_v61 = vmul.f32 %v485_v44, %v1603_v48  ;;  %v496_v62 = vadd.f32 %v1609_v52, %v490_v58 }
 0x32b   :  { %v1698_v10 = vadd.f32 %v423_v6, %v421_v2 }
 0x32d   :  { %v426_v12 = vpack.c.bf16 %v1698_v10, %v1696_v8 }
 0x32f   :  { %1188 = vmatpush3.bf16.msra.mxu1 %v426_v12  ;;  %v497_v12 = vadd.f32 %v1616_v56, %v491_v61 }
 0x330   :  { %1215 = vmatprep.subr.bf16.mxu1 %v1481_v0 }
 0x332   :  { %1190 = vmatmul.mubr.msk.bf16.vlgmr.msra.gmra.mrb[12].mxu1 %vm69_vm1, %v1514_v1 }
 0x333   :  { %1193 = vmatprep.mubr.msk.bf16.mxu1 %vm1482_vm0, %v1481_v0 }
 0x33a   :  { %1194 = vmatmul.mubr.msk.bf16.gmra.mrb[16].mxu1 %vm69_vm1, %v1527_v3 }
 0x33b   :  { %1197 = vmatprep.mubr.msk.bf16.mxu1 %vm1482_vm0, %v1481_v0 }
 0x342   :  { %1198 = vmatmul.mubr.msk.bf16.gmra.mrb[20].mxu1 %vm69_vm1, %v1536_v4 }
 0x343   :  { %1217 = vmatprep.mubr.msk.bf16.mxu1 %vm1482_vm0, %v1481_v0 }
 0x405   :  { %v461_v18 = vpop.f32.mrb[12].mxu1 }
 0x406   :  { %v498_v19 = vadd.f32 %v492_v15, %v461_v18  ;;  %v1191_v20 = vpop.f32.mrb[13].mxu1 }
 0x407   :  { %v464_v23 = vpop.f32.mrb[14].mxu1 }
 0x408   :  { %v1077_v24 = vmul.f32 -1.442695, %v498_v19  ;;  %v499_v28 = vadd.f32 %v493_v17, %v464_v23  ;;  %v1192_v30 = vpop.f32.mrb[15].mxu1 }
 0x40a   :  { %1325 = vpow2.f32 %v1077_v24  ;;  %v1078_v32 = vmul.f32 -1.442695, %v499_v28 }
 0x40c   :  { %1327 = vpow2.f32 %v1078_v32 }
 0x40d   :  { %v469_v35 = vpop.f32.mrb[16].mxu1 }
 0x40e   :  { %v500_v36 = vadd.f32 %v494_v33, %v469_v35  ;;  %v1195_v29 = vpop.f32.mrb[17].mxu1 }
 0x40f   :  { %v472_v37 = vpop.f32.mrb[18].mxu1 }
 0x410   :  { %v1079_v38 = vmul.f32 -1.442695, %v500_v36  ;;  %v501_v39 = vadd.f32 %v495_v34, %v472_v37  ;;  %v1196_v40 = vpop.f32.mrb[19].mxu1 }
 0x412   :  { %1329 = vpow2.f32 %v1079_v38  ;;  %v1080_v41 = vmul.f32 -1.442695, %v501_v39 }
 0x414   :  { %v1326_v42 = vpop.eup %1325  ;;  %1331 = vpow2.f32 %v1080_v41 }
 0x415   :  { %v514_v43 = vadd.f32 1.0, %v1326_v42  ;;  %v477_v49 = vpop.f32.mrb[20].mxu1 }
 0x416   :  { %v1328_v27 = vpop.eup %1327  ;;  %v1199_v50 = vpop.f32.mrb[21].mxu1  ;;  %v526_v60 = vadd.f32 %v1598_v47, %v477_v49 }
 0x417   :  { %1333 = vrcp.f32 %v514_v43  ;;  %v515_v51 = vadd.f32 1.0, %v1328_v27  ;;  %v480_v53 = vpop.f32.mrb[22].mxu1 }
 0x418   :  { %v1200_v54 = vpop.f32.mrb[23].mxu1  ;;  %v527_v45 = vadd.f32 %v1621_v57, %v480_v53 }
 0x419   :  { %1335 = vrcp.f32 %v515_v51 }
 0x41c   :  { %v1330_v55 = vpop.eup %1329 }
 0x41d   :  { %v516_v59 = vadd.f32 1.0, %v1330_v55 }
 0x41e   :  { %v1332_v25 = vpop.eup %1331 }
 0x41f   :  { %v517_v2 = vadd.f32 1.0, %v1332_v25  ;;  %1337 = vrcp.f32 %v516_v59 }
 0x421   :  { %v1334_v63 = vpop.eup %1333  ;;  %1339 = vrcp.f32 %v517_v2 }
 0x422   :  { %v528_v6 = vmul.f32 %v1334_v63, %v526_v60 }
 0x423   :  { %v1336_v14 = vpop.eup %1335 }
 0x424   :  { %v530_v15 = vadd.f32 %v528_v6, %v496_v62  ;;  %v529_v17 = vmul.f32 %v1336_v14, %v527_v45 }
 0x426   :  { %1341 = vtanh.f32 %v530_v15  ;;  %v531_v18 = vadd.f32 %v529_v17, %v497_v12 }
 0x428   :  { %1343 = vtanh.f32 %v531_v18 }
 0x429   :  { %v1338_v19 = vpop.eup %1337 }
 0x42a   :  { %v534_v20 = vsub.f32 1.0, %v1338_v19  ;;  %v538_v28 = vmul.f32 %v1338_v19, %v1696_v8  ;;  %v601_v8 = vstv %s1084_s26 }
 0x42b   :  { %v1340_v44 = vpop.eup %1339  ;;  %v603_v36 = vmul.f32 %v601_v8, %v1550_v7  ;;  %v604_v41 = vmul.f32 %v601_v8, %v1568_v13  ;;  %v605_v50 = vmul.f32 %v601_v8, %v1574_v16 }
 0x42c   :  { %v535_v23 = vsub.f32 1.0, %v1340_v44  ;;  %v539_v32 = vmul.f32 %v1340_v44, %v1698_v10  ;;  %v602_v10 = vmul.f32 %v601_v8, %v1545_v5 }
 0x42d   :  { %v609_v37 = vadd.f32 %v1562_v11, %v603_v36  ;;  %v610_v53 = vadd.f32 %v1580_v21, %v604_v41  ;;  %v611_v54 = vadd.f32 %v1586_v26, %v605_v50 }
 0x42e   :  { %v608_v29 = vadd.f32 %v1556_v9, %v602_v10 }
 0x430   :  { %v1342_v22 = vpop.eup %1341 }
 0x431   :  { %v536_v24 = vmul.f32 %v1342_v22, %v534_v20  ;;  %v606_v20 = vmul.f32 %v601_v8, %v1593_v46 }
 0x432   :  { %v1344_v30 = vpop.eup %1343 }
 0x433   :  { %v537_v31 = vmul.f32 %v1344_v30, %v535_v23  ;;  %v1731_v33 = vadd.f32 %v538_v28, %v536_v24  ;;  %v607_v24 = vmul.f32 %v601_v8, %v1603_v48  ;;  %v612_v28 = vadd.f32 %v1609_v52, %v606_v20 }
 0x435   :  { %v1733_v34 = vadd.f32 %v539_v32, %v537_v31 }
 0x437   :  { %v542_v35 = vpack.c.bf16 %v1733_v34, %v1731_v33 }
 0x439   :  { %1202 = vmatpush3.bf16.msra.mxu0 %v542_v35  ;;  %v613_v35 = vadd.f32 %v1616_v56, %v607_v24 }
 0x43a   :  { %1229 = vmatprep.subr.bf16.mxu0 %v1481_v0 }
 0x43c   :  { %1204 = vmatmul.mubr.msk.bf16.vlgmr.msra.gmra.mrb[24].mxu0 %vm69_vm1, %v1514_v1 }
 0x43d   :  { %1207 = vmatprep.mubr.msk.bf16.mxu0 %vm1482_vm0, %v1481_v0 }
 0x444   :  { %1208 = vmatmul.mubr.msk.bf16.gmra.mrb[28].mxu0 %vm69_vm1, %v1527_v3 }
 0x445   :  { %1211 = vmatprep.mubr.msk.bf16.mxu0 %vm1482_vm0, %v1481_v0 }
 0x44c   :  { %1212 = vmatmul.mubr.msk.bf16.gmra.mrb[32].mxu0 %vm69_vm1, %v1536_v4 }
 0x44d   :  { %1231 = vmatprep.mubr.msk.bf16.mxu0 %vm1482_vm0, %v1481_v0 }
 0x50f   :  { %v577_v38 = vpop.f32.mrb[24].mxu0 }
 0x510   :  { %v614_v39 = vadd.f32 %v608_v29, %v577_v38  ;;  %v1205_v40 = vpop.f32.mrb[25].mxu0 }
 0x511   :  { %v580_v42 = vpop.f32.mrb[26].mxu0 }
 0x512   :  { %v1085_v43 = vmul.f32 -1.442695, %v614_v39  ;;  %v615_v49 = vadd.f32 %v609_v37, %v580_v42  ;;  %v1206_v27 = vpop.f32.mrb[27].mxu0 }
 0x514   :  { %1345 = vpow2.f32 %v1085_v43  ;;  %v1086_v51 = vmul.f32 -1.442695, %v615_v49 }
 0x516   :  { %1347 = vpow2.f32 %v1086_v51 }
 0x517   :  { %v585_v55 = vpop.f32.mrb[28].mxu0 }
 0x518   :  { %v616_v58 = vadd.f32 %v610_v53, %v585_v55  ;;  %v1209_v25 = vpop.f32.mrb[29].mxu0 }
 0x519   :  { %v588_v59 = vpop.f32.mrb[30].mxu0 }
 0x51a   :  { %v1087_v60 = vmul.f32 -1.442695, %v616_v58  ;;  %v617_v61 = vadd.f32 %v611_v54, %v588_v59  ;;  %v1210_v62 = vpop.f32.mrb[31].mxu0 }
 0x51c   :  { %1349 = vpow2.f32 %v1087_v60  ;;  %v1088_v63 = vmul.f32 -1.442695, %v617_v61 }
 0x51e   :  { %v1346_v2 = vpop.eup %1345  ;;  %1351 = vpow2.f32 %v1088_v63 }
 0x51f   :  { %v630_v6 = vadd.f32 1.0, %v1346_v2  ;;  %v593_v12 = vpop.f32.mrb[32].mxu0 }
 0x520   :  { %v1348_v45 = vpop.eup %1347  ;;  %v1213_v14 = vpop.f32.mrb[33].mxu0  ;;  %v642_v23 = vadd.f32 %v1598_v47, %v593_v12 }
 0x521   :  { %1353 = vrcp.f32 %v630_v6  ;;  %v631_v15 = vadd.f32 1.0, %v1348_v45  ;;  %v596_v17 = vpop.f32.mrb[34].mxu0 }
 0x522   :  { %v1214_v18 = vpop.f32.mrb[35].mxu0  ;;  %v643_v10 = vadd.f32 %v1621_v57, %v596_v17 }
 0x523   :  { %1355 = vrcp.f32 %v631_v15 }
 0x526   :  { %v1350_v19 = vpop.eup %1349 }
 0x527   :  { %v632_v22 = vadd.f32 1.0, %v1350_v19 }
 0x528   :  { %v1352_v44 = vpop.eup %1351 }
 0x529   :  { %v633_v31 = vadd.f32 1.0, %v1352_v44  ;;  %1357 = vrcp.f32 %v632_v22 }
 0x52b   :  { %v1354_v30 = vpop.eup %1353  ;;  %1359 = vrcp.f32 %v633_v31 }
 0x52c   :  { %v644_v32 = vmul.f32 %v1354_v30, %v642_v23 }
 0x52d   :  { %v1356_v36 = vpop.eup %1355 }
 0x52e   :  { %v646_v29 = vadd.f32 %v644_v32, %v612_v28  ;;  %v645_v37 = vmul.f32 %v1356_v36, %v643_v10 }
 0x530   :  { %1361 = vtanh.f32 %v646_v29  ;;  %v647_v38 = vadd.f32 %v645_v37, %v613_v35 }
 0x532   :  { %1363 = vtanh.f32 %v647_v38 }
 0x533   :  { %v1358_v39 = vpop.eup %1357 }
 0x534   :  { %v650_v40 = vsub.f32 1.0, %v1358_v39  ;;  %v654_v49 = vmul.f32 %v1358_v39, %v1731_v33  ;;  %v717_v33 = vstv %s1092_s27 }
 0x535   :  { %v1360_v8 = vpop.eup %1359  ;;  %v719_v58 = vmul.f32 %v717_v33, %v1550_v7  ;;  %v720_v63 = vmul.f32 %v717_v33, %v1568_v13  ;;  %v721_v14 = vmul.f32 %v717_v33, %v1574_v16 }
 0x536   :  { %v651_v42 = vsub.f32 1.0, %v1360_v8  ;;  %v655_v51 = vmul.f32 %v1360_v8, %v1733_v34  ;;  %v718_v34 = vmul.f32 %v717_v33, %v1545_v5 }
 0x537   :  { %v725_v59 = vadd.f32 %v1562_v11, %v719_v58  ;;  %v726_v17 = vadd.f32 %v1580_v21, %v720_v63  ;;  %v727_v18 = vadd.f32 %v1586_v26, %v721_v14 }
 0x538   :  { %v724_v25 = vadd.f32 %v1556_v9, %v718_v34 }
 0x53a   :  { %v1362_v41 = vpop.eup %1361 }
 0x53b   :  { %v652_v43 = vmul.f32 %v1362_v41, %v650_v40  ;;  %v722_v40 = vmul.f32 %v717_v33, %v1593_v46 }
 0x53c   :  { %v1364_v27 = vpop.eup %1363 }
 0x53d   :  { %v653_v50 = vmul.f32 %v1364_v27, %v651_v42  ;;  %v1766_v53 = vadd.f32 %v654_v49, %v652_v43  ;;  %v723_v43 = vmul.f32 %v717_v33, %v1603_v48  ;;  %v728_v49 = vadd.f32 %v1609_v52, %v722_v40 }
 0x53f   :  { %v1768_v54 = vadd.f32 %v655_v51, %v653_v50 }
 0x541   :  { %v658_v55 = vpack.c.bf16 %v1768_v54, %v1766_v53 }
 0x543   :  { %1216 = vmatpush3.bf16.msra.mxu1 %v658_v55  ;;  %v729_v55 = vadd.f32 %v1616_v56, %v723_v43 }
 0x544   :  { %1243 = vmatprep.subr.bf16.mxu1 %v1481_v0 }
 0x546   :  { %1218 = vmatmul.mubr.msk.bf16.vlgmr.msra.gmra.mrb[24].mxu1 %vm69_vm1, %v1514_v1 }
 0x547   :  { %1221 = vmatprep.mubr.msk.bf16.mxu1 %vm1482_vm0, %v1481_v0 }
 0x54e   :  { %1222 = vmatmul.mubr.msk.bf16.gmra.mrb[28].mxu1 %vm69_vm1, %v1527_v3 }
 0x54f   :  { %1225 = vmatprep.mubr.msk.bf16.mxu1 %vm1482_vm0, %v1481_v0 }
 0x556   :  { %1226 = vmatmul.mubr.msk.bf16.gmra.mrb[32].mxu1 %vm69_vm1, %v1536_v4 }
 0x557   :  { %1245 = vmatprep.mubr.msk.bf16.mxu1 %vm1482_vm0, %v1481_v0 }
 0x619   :  { %v693_v60 = vpop.f32.mrb[24].mxu1 }
 0x61a   :  { %v730_v61 = vadd.f32 %v724_v25, %v693_v60  ;;  %v1219_v62 = vpop.f32.mrb[25].mxu1 }
 0x61b   :  { %v696_v2 = vpop.f32.mrb[26].mxu1 }
 0x61c   :  { %v1093_v6 = vmul.f32 -1.442695, %v730_v61  ;;  %v731_v12 = vadd.f32 %v725_v59, %v696_v2  ;;  %v1220_v45 = vpop.f32.mrb[27].mxu1 }
 0x61e   :  { %1365 = vpow2.f32 %v1093_v6  ;;  %v1094_v15 = vmul.f32 -1.442695, %v731_v12 }
 0x620   :  { %1367 = vpow2.f32 %v1094_v15 }
 0x621   :  { %v701_v19 = vpop.f32.mrb[28].mxu1 }
 0x622   :  { %v732_v20 = vadd.f32 %v726_v17, %v701_v19  ;;  %v1223_v44 = vpop.f32.mrb[29].mxu1 }
 0x623   :  { %v704_v22 = vpop.f32.mrb[30].mxu1 }
 0x624   :  { %v1095_v23 = vmul.f32 -1.442695, %v732_v20  ;;  %v733_v24 = vadd.f32 %v727_v18, %v704_v22  ;;  %v1224_v28 = vpop.f32.mrb[31].mxu1 }
 0x626   :  { %1369 = vpow2.f32 %v1095_v23  ;;  %v1096_v30 = vmul.f32 -1.442695, %v733_v24 }
 0x628   :  { %v1366_v31 = vpop.eup %1365  ;;  %1371 = vpow2.f32 %v1096_v30 }
 0x629   :  { %v746_v32 = vadd.f32 1.0, %v1366_v31  ;;  %v709_v35 = vpop.f32.mrb[32].mxu1 }
 0x62a   :  { %v1368_v10 = vpop.eup %1367  ;;  %v1227_v36 = vpop.f32.mrb[33].mxu1  ;;  %v758_v42 = vadd.f32 %v1598_v47, %v709_v35 }
 0x62b   :  { %1373 = vrcp.f32 %v746_v32  ;;  %v747_v29 = vadd.f32 1.0, %v1368_v10  ;;  %v712_v37 = vpop.f32.mrb[34].mxu1 }
 0x62c   :  { %v1228_v38 = vpop.f32.mrb[35].mxu1  ;;  %v759_v34 = vadd.f32 %v1621_v57, %v712_v37 }
 0x62d   :  { %1375 = vrcp.f32 %v747_v29 }
 0x630   :  { %v1370_v39 = vpop.eup %1369 }
 0x631   :  { %v748_v41 = vadd.f32 1.0, %v1370_v39 }
 0x632   :  { %v1372_v8 = vpop.eup %1371 }
 0x633   :  { %v749_v50 = vadd.f32 1.0, %v1372_v8  ;;  %1377 = vrcp.f32 %v748_v41 }
 0x635   :  { %v1374_v27 = vpop.eup %1373  ;;  %1379 = vrcp.f32 %v749_v50 }
 0x636   :  { %v760_v51 = vmul.f32 %v1374_v27, %v758_v42 }
 0x637   :  { %v1376_v58 = vpop.eup %1375 }
 0x638   :  { %v762_v25 = vadd.f32 %v760_v51, %v728_v49  ;;  %v761_v59 = vmul.f32 %v1376_v58, %v759_v34 }
 0x63a   :  { %1381 = vtanh.f32 %v762_v25  ;;  %v763_v60 = vadd.f32 %v761_v59, %v729_v55 }
 0x63c   :  { %1383 = vtanh.f32 %v763_v60 }
 0x63d   :  { %v1378_v61 = vpop.eup %1377 }
 0x63e   :  { %v766_v62 = vsub.f32 1.0, %v1378_v61  ;;  %v770_v12 = vmul.f32 %v1378_v61, %v1766_v53  ;;  %v833_v53 = vstv %s1100_s28 }
 0x63f   :  { %v1380_v33 = vpop.eup %1379  ;;  %v835_v20 = vmul.f32 %v833_v53, %v1550_v7  ;;  %v838_v49 = vmul.f32 %v833_v53, %v1593_v46  ;;  %v839_v55 = vmul.f32 %v833_v53, %v1603_v48 }
 0x640   :  { %v767_v2 = vsub.f32 1.0, %v1380_v33  ;;  %v771_v15 = vmul.f32 %v1380_v33, %v1768_v54  ;;  %v834_v54 = vmul.f32 %v833_v53, %v1545_v5 }
 0x641   :  { %v841_v44 = vadd.f32 %v1562_v11, %v835_v20  ;;  %v844_v34 = vadd.f32 %v1609_v52, %v838_v49  ;;  %v845_v60 = vadd.f32 %v1616_v56, %v839_v55  ;;  %v949_v20 = vstv %s1108_s8 }
 0x644   :  { %v1382_v63 = vpop.eup %1381 }
 0x645   :  { %v768_v6 = vmul.f32 %v1382_v63, %v766_v62 }
 0x646   :  { %v1384_v45 = vpop.eup %1383 }
 0x647   :  { %v769_v14 = vmul.f32 %v1384_v45, %v767_v2  ;;  %v1801_v17 = vadd.f32 %v770_v12, %v768_v6 }
 0x649   :  { %v1803_v18 = vadd.f32 %v771_v15, %v769_v14 }
 0x64b   :  { %v774_v19 = vpack.c.bf16 %v1803_v18, %v1801_v17 }
 0x64d   :  { %1230 = vmatpush3.bf16.msra.mxu0 %v774_v19 }
 0x650   :  { %1232 = vmatmul.mubr.msk.bf16.vlgmr.msra.gmra.mrb[36].mxu0 %vm69_vm1, %v1514_v1  ;;  %v840_v1 = vadd.f32 %v1556_v9, %v834_v54  ;;  %v1425_v54 = vld [vmem:[%s1921_s1] sm:$0xff]  }
 0x651   :  { %1235 = vmatprep.mubr.msk.bf16.mxu0 %vm1482_vm0, %v1481_v0 }
 0x658   :  { %1236 = vmatmul.mubr.msk.bf16.gmra.mrb[40].mxu0 %vm69_vm1, %v1527_v3  ;;  %v836_v3 = vmul.f32 %v833_v53, %v1568_v13 }
 0x659   :  { %1239 = vmatprep.mubr.msk.bf16.mxu0 %vm1482_vm0, %v1481_v0 }
 0x65a   :  { %v842_v5 = vadd.f32 %v1580_v21, %v836_v3  ;;  %v1431_v3 = vld [vmem:[%s1922_s2 + $0x38] sm:$0xff] }
 0x660   :  { %1240 = vmatmul.mubr.msk.bf16.gmra.mrb[44].mxu0 %vm69_vm1, %v1536_v4  ;;  %v837_v4 = vmul.f32 %v833_v53, %v1574_v16 }
 0x662   :  { %v843_v7 = vadd.f32 %v1586_v26, %v837_v4  ;;  %v1432_v4 = vld [vmem:[%s1922_s2 + $0x10] sm:$0xff] }
 0x723   :  { %v809_v22 = vpop.f32.mrb[36].mxu0 }
 0x724   :  { %v846_v23 = vadd.f32 %v840_v1, %v809_v22  ;;  %v1233_v24 = vpop.f32.mrb[37].mxu0  ;;  %v1428_v1 = vld [vmem:[%s1922_s2] sm:$0xff]  ;;  %v1429_v22 = vld [vmem:[%s1922_s2 + $0x8] sm:$0xff] }
 0x725   :  { %v812_v28 = vpop.f32.mrb[38].mxu0 }
 0x726   :  { %v1101_v30 = vmul.f32 -1.442695, %v846_v23  ;;  %v847_v31 = vadd.f32 %v841_v44, %v812_v28  ;;  %v1234_v32 = vpop.f32.mrb[39].mxu0  ;;  %v950_v44 = vmul.f32 %v1428_v1, %v949_v20  ;;  %v951_v23 = vmul.f32 %v1429_v22, %v949_v20 }
 0x728   :  { %1385 = vpow2.f32 %v1101_v30  ;;  %v1102_v35 = vmul.f32 -1.442695, %v847_v31  ;;  %v957_v28 = vadd.f32 %v1431_v3, %v951_v23 }
 0x72a   :  { %1387 = vpow2.f32 %v1102_v35  ;;  %v952_v35 = vmul.f32 %v1432_v4, %v949_v20 }
 0x72b   :  { %v817_v9 = vpop.f32.mrb[40].mxu0 }
 0x72c   :  { %v848_v11 = vadd.f32 %v842_v5, %v817_v9  ;;  %v1237_v10 = vpop.f32.mrb[41].mxu0 }
 0x72d   :  { %v820_v36 = vpop.f32.mrb[42].mxu0  ;;  %v1433_v10 = vld [vmem:[%s1922_s2 + $0x18] sm:$0xff] }
 0x72e   :  { %v1103_v29 = vmul.f32 -1.442695, %v848_v11  ;;  %v849_v37 = vadd.f32 %v843_v7, %v820_v36  ;;  %v1238_v13 = vpop.f32.mrb[43].mxu0  ;;  %v953_v36 = vmul.f32 %v1433_v10, %v949_v20 }
 0x730   :  { %1389 = vpow2.f32 %v1103_v29  ;;  %v1104_v38 = vmul.f32 -1.442695, %v849_v37  ;;  %v1434_v37 = vld [vmem:[%s1922_s2 + $0x40] sm:$0xff] }
 0x731   :  { %v958_v13 = vadd.f32 %v1434_v37, %v952_v35  ;;  %v1045_v35 = vld [vmem:[%s1922_s2 + $0x78] sm:$0xff] }
 0x732   :  { %v1386_v39 = vpop.eup %1385  ;;  %1391 = vpow2.f32 %v1104_v38  ;;  %v1435_v38 = vld [vmem:[%s1922_s2 + $0x48] sm:$0xff] }
 0x733   :  { %v862_v40 = vadd.f32 1.0, %v1386_v39  ;;  %v825_v16 = vpop.f32.mrb[44].mxu0  ;;  %v959_v39 = vadd.f32 %v1435_v38, %v953_v36 }
 0x734   :  { %v1388_v8 = vpop.eup %1387  ;;  %v1241_v41 = vpop.f32.mrb[45].mxu0  ;;  %v874_v51 = vadd.f32 %v1598_v47, %v825_v16 }
 0x735   :  { %1393 = vrcp.f32 %v862_v40  ;;  %v863_v21 = vadd.f32 1.0, %v1388_v8  ;;  %v828_v42 = vpop.f32.mrb[46].mxu0 }
 0x736   :  { %v1242_v43 = vpop.f32.mrb[47].mxu0  ;;  %v875_v61 = vadd.f32 %v1621_v57, %v828_v42 }
 0x737   :  { %1395 = vrcp.f32 %v863_v21 }
 0x73a   :  { %v1390_v26 = vpop.eup %1389 }
 0x73b   :  { %v864_v50 = vadd.f32 1.0, %v1390_v26 }
 0x73c   :  { %v1392_v27 = vpop.eup %1391 }
 0x73d   :  { %v865_v25 = vadd.f32 1.0, %v1392_v27  ;;  %1397 = vrcp.f32 %v864_v50 }
 0x73f   :  { %v1394_v58 = vpop.eup %1393  ;;  %1399 = vrcp.f32 %v865_v25 }
 0x740   :  { %v876_v59 = vmul.f32 %v1394_v58, %v874_v51 }
 0x741   :  { %v1396_v62 = vpop.eup %1395 }
 0x742   :  { %v878_v33 = vadd.f32 %v876_v59, %v844_v34  ;;  %v877_v63 = vmul.f32 %v1396_v62, %v875_v61 }
 0x744   :  { %1401 = vtanh.f32 %v878_v33  ;;  %v879_v46 = vadd.f32 %v877_v63, %v845_v60  ;;  %v1436_v60 = vld [vmem:[%s1922_s2 + $0x20] sm:$0xff] }
 0x745   :  { %v954_v61 = vmul.f32 %v1436_v60, %v949_v20  ;;  %v1437_v63 = vld [vmem:[%s1922_s2 + $0x60] sm:$0xff] }
 0x746   :  { %1403 = vtanh.f32 %v879_v46 }
 0x747   :  { %v1398_v47 = vpop.eup %1397 }
 0x748   :  { %v882_v2 = vsub.f32 1.0, %v1398_v47  ;;  %v886_v45 = vmul.f32 %v1398_v47, %v1801_v17  ;;  %v1426_v17 = vld [vmem:[%s1921_s1 + $0x8] sm:$0xff]  }
 0x749   :  { %v1400_v48 = vpop.eup %1399  ;;  %v1438_v47 = vld [vmem:[%s1922_s2 + $0x28] sm:$0xff] }
 0x74a   :  { %v883_v52 = vsub.f32 1.0, %v1400_v48  ;;  %v887_v56 = vmul.f32 %v1400_v48, %v1803_v18  ;;  %v1427_v18 = vld [vmem:[%s1921_s1 + $0x10] sm:$0xff]   ;;  %s1027_s1 = sshll.u32 %s1484_s14, 4  ;;  %s1028_s1 = int_to_ptr.vmem [resolvable:$true] %s1027_s1 }
 0x74b   :  { %v1439_v48 = vld [vmem:[%s1922_s2 + $0x50] sm:$0xff]  ;;  %s1454_s15 = scalar_lea.vmem %s1028_s1, 16  ;;  %s1458_s16 = scalar_lea.vmem %s1028_s1, 32 }
 0x74c   :  { %p1455_p5 = scmp.ne.s32.totalorder %s1028_s1, %s1454_s15  ;;  %p1459_p6 = scmp.lt.s32.totalorder %s1028_s1, %s1028_s1 }
 0x74d   :  { %p1460_p7 = scmp.lt.s32.totalorder %s1458_s16, %s1454_s15 }
 0x74e   :  { %v1402_v6 = vpop.eup %1401 }
 0x74f   :  { %v884_v12 = vmul.f32 %v1402_v6, %v882_v2  ;;  %v955_v2 = vmul.f32 %v1438_v47, %v949_v20  ;;  %v960_v6 = vadd.f32 %v1439_v48, %v954_v61  ;;  %p1461_p8 = por %p1460_p7, %p1459_p6 }
 0x750   :  { %v1404_v14 = vpop.eup %1403 }
 0x751   :  { %v885_v15 = vmul.f32 %v1404_v14, %v883_v52  ;;  %v1833_v57 = vadd.f32 %v886_v45, %v884_v12  ;;  %v1440_v14 = vld [vmem:[%s1922_s2 + $0x58] sm:$0xff]  ;;  %p1462_p9 = pnand %p1461_p8, %p1455_p5 }
 0x753   :  { %v1835_v19 = vadd.f32 %v887_v56, %v885_v15  ;;  %v961_v15 = vadd.f32 %v1440_v14, %v955_v2  ;;  %v1441_v56 = vld [vmem:[%s1922_s2 + $0x68] sm:$0xff] }
 0x755   :  { %v890_v53 = vpack.c.bf16 %v1835_v19, %v1833_v57 }
 0x757   :  { %1244 = vmatpush3.bf16.msra.mxu1 %v890_v53 }
 0x75a   :  { %1246 = vmatmul.mubr.msk.bf16.vlgmr.msra.gmra.mrb[36].mxu1 %vm69_vm1, %v1425_v54 }
 0x75b   :  { %1249 = vmatprep.mubr.msk.bf16.mxu1 %vm1482_vm0, %v1481_v0 }
 0x762   :  { %1250 = vmatmul.mubr.msk.bf16.gmra.mrb[40].mxu1 %vm69_vm1, %v1426_v17 }
 0x763   :  { %1253 = vmatprep.mubr.msk.bf16.mxu1 %vm1482_vm0, %v1481_v0  ;;  %v1430_v0 = vld [vmem:[%s1922_s2 + $0x30] sm:$0xff] }
 0x764   :  { %v956_v24 = vadd.f32 %v1430_v0, %v950_v44 }
 0x76a   :  { %1254 = vmatmul.mubr.msk.bf16.gmra.mrb[44].mxu1 %vm69_vm1, %v1427_v18 }
 0x82d   :  { %v925_v30 = vpop.f32.mrb[36].mxu1 }
 0x82e   :  { %v962_v31 = vadd.f32 %v956_v24, %v925_v30  ;;  %v1247_v32 = vpop.f32.mrb[37].mxu1  ;;  %v1044_v30 = vld [vmem:[%s1922_s2 + $0x70] sm:$0xff] }
 0x82f   :  { %v928_v5 = vpop.f32.mrb[38].mxu1 }
 0x830   :  { %v1109_v7 = vmul.f32 -1.442695, %v962_v31  ;;  %v963_v9 = vadd.f32 %v957_v28, %v928_v5  ;;  %v1248_v11 = vpop.f32.mrb[39].mxu1 }
 0x832   :  { %1405 = vpow2.f32 %v1109_v7  ;;  %v1110_v29 = vmul.f32 -1.442695, %v963_v9 }
 0x834   :  { %1407 = vpow2.f32 %v1110_v29 }
 0x835   :  { %v933_v40 = vpop.f32.mrb[40].mxu1 }
 0x836   :  { %v964_v16 = vadd.f32 %v958_v13, %v933_v40  ;;  %v1251_v8 = vpop.f32.mrb[41].mxu1 }
 0x837   :  { %v936_v41 = vpop.f32.mrb[42].mxu1 }
 0x838   :  { %v1111_v21 = vmul.f32 -1.442695, %v964_v16  ;;  %v965_v42 = vadd.f32 %v959_v39, %v936_v41  ;;  %v1252_v43 = vpop.f32.mrb[43].mxu1 }
 0x83a   :  { %1409 = vpow2.f32 %v1111_v21  ;;  %v1112_v26 = vmul.f32 -1.442695, %v965_v42 }
 0x83c   :  { %v1406_v49 = vpop.eup %1405  ;;  %1411 = vpow2.f32 %v1112_v26 }
 0x83d   :  { %v978_v27 = vadd.f32 1.0, %v1406_v49  ;;  %v941_v50 = vpop.f32.mrb[44].mxu1 }
 0x83e   :  { %v1408_v51 = vpop.eup %1407  ;;  %v1255_v55 = vpop.f32.mrb[45].mxu1  ;;  %v990_v46 = vadd.f32 %v1437_v63, %v941_v50 }
 0x83f   :  { %1413 = vrcp.f32 %v978_v27  ;;  %v979_v34 = vadd.f32 1.0, %v1408_v51  ;;  %v944_v58 = vpop.f32.mrb[46].mxu1 }
 0x840   :  { %v1256_v25 = vpop.f32.mrb[47].mxu1  ;;  %v991_v53 = vadd.f32 %v1441_v56, %v944_v58 }
 0x841   :  { %1415 = vrcp.f32 %v979_v34 }
 0x844   :  { %v1410_v59 = vpop.eup %1409 }
 0x845   :  { %v980_v33 = vadd.f32 1.0, %v1410_v59 }
 0x846   :  { %v1412_v62 = vpop.eup %1411 }
 0x847   :  { %v981_v12 = vadd.f32 1.0, %v1412_v62  ;;  %1417 = vrcp.f32 %v980_v33 }
 0x849   :  { %v1414_v52 = vpop.eup %1413  ;;  %1419 = vrcp.f32 %v981_v12 }
 0x84a   :  { %v992_v45 = vmul.f32 %v1414_v52, %v990_v46 }
 0x84b   :  { %v1416_v54 = vpop.eup %1415 }
 0x84c   :  { %v994_v17 = vadd.f32 %v992_v45, %v960_v6  ;;  %v993_v18 = vmul.f32 %v1416_v54, %v991_v53 }
 0x84e   :  { %1421 = vtanh.f32 %v994_v17  ;;  %v995_v20 = vadd.f32 %v993_v18, %v961_v15 }
 0x850   :  { %1423 = vtanh.f32 %v995_v20 }
 0x851   :  { %v1418_v1 = vpop.eup %1417 }
 0x852   :  { %v998_v44 = vsub.f32 1.0, %v1418_v1  ;;  %v1002_v0 = vmul.f32 %v1418_v1, %v1833_v57 }
 0x853   :  { %v1420_v22 = vpop.eup %1419 }
 0x854   :  { %v999_v24 = vsub.f32 1.0, %v1420_v22  ;;  %v1003_v31 = vmul.f32 %v1420_v22, %v1835_v19  ;;  %v1046_v19 = vld [vmem:[%s1922_s2 + $0x80] sm:$0xff] }
 0x858   :  { %v1422_v23 = vpop.eup %1421 }
 0x859   :  { %v1000_v3 = vmul.f32 %v1422_v23, %v998_v44 }
 0x85a   :  { %v1424_v28 = vpop.eup %1423 }
 0x85b   :  { %v1001_v32 = vmul.f32 %v1424_v28, %v999_v24  ;;  %v1004_v4 = vadd.f32 %v1002_v0, %v1000_v3 }
 0x85d   :  { %v1005_v5 = vadd.f32 %v1003_v31, %v1001_v32  ;;  %v1006_v7 = vmul.f32 %v1044_v30, %v1004_v4 }
 0x85f   :  { %v1007_v9 = vmul.f32 %v1045_v35, %v1005_v5  ;;  %v1009_v57 = vsel %vm1008_vm2, %v1006_v7, 0.0 }
 0x861   :  { %v1010_v11 = vsel %vm1008_vm2, %v1007_v9, 0.0 }
 0x862   :  { %v1011_v10 = vadd.f32 %v1010_v11, %v1009_v57 }
 0x864   :  { %v1012_v36 = vrot.slane %v1011_v10, 4 }
 0x866   :  { %v1013_v29 = vadd.f32 %v1012_v36, %v1011_v10 }
 0x868   :  { %v1014_v37 = vrot.slane %v1013_v29, 2 }
 0x86a   :  { %v1015_v13 = vadd.f32 %v1014_v37, %v1013_v29 }
 0x86c   :  { %v1016_v38 = vrot.slane %v1015_v13, 1 }
 0x86e   :  { %v1017_v39 = vadd.f32 %v1016_v38, %v1015_v13 }
 0x870   :  { %v1018_v40 = vadd.f32 %v1046_v19, %v1017_v39 }
 0x872   :  { %1020 = vst.msk [vmem:[#allocation5] sm:$0x1] %vm1019_vm3, %v1018_v40 }
 0x873   :  { %1465 = shalt.err (!%p1462_p9)
}
 0x874   :  { %s1466_s18 = scalar_lea.hbm %s1923_s3, 16 }
 0x875   :  { %p1467_p10 = scmp.ne.s32.totalorder %s1923_s3, %s1466_s18  ;;  %p1470_p11 = scmp.lt.u32.totalorder %s1466_s18, %s1923_s3 }
 0x877   :  { %p1472_p12 = pnand %p1470_p11, %p1467_p10 }
 0x879   :  { %1475 = shalt.err (!%p1472_p12)
}
 0x87a   :  { %1030 = dma.vmem_to_hbm [thread:$0]  %s1028_s1, 16, %s1923_s3, [#allocation3]  }
 0x87b   :  { %1478 = dma.done.wait [#allocation3], 16  }
 0x87c   :  { %1479 = vsyncadd [#allocation3], 4294967280 }
 0x87d   :  { %1034 = vsyncpa [#allocation3], 1 }
 0x87e   :  { %1035 = vsyncpa [#allocation4], 1 }

</bundles_post_ra>
